<compile_context>
chip_gen: v6e
topology: v6e:2x2x1
jax: 0.10.0
libtpu: 0.0.40
codegen_flags: <defaults>
</compile_context>

<pallas_src>
import math
from functools import partial

import jax
import jax.numpy as jnp
from jax.experimental import pallas as pl
from jax.experimental.pallas import tpu as pltpu


_TM_MAX = 1024          # max token-tile rows
_HID_CHUNK = 512        # target hidden-chunk width (multiple of 128)
_APPROX_GELU = False    # False = exact erf (torch nn.GELU default)
_INV_SQRT2 = 1.0 / math.sqrt(2.0)


def _vmem_capacity_bytes():
    try:
        info = pltpu.get_tpu_info()
        cap = getattr(info, "vmem_capacity_bytes", None)
        if cap:
            return int(cap)
    except Exception:
        pass
    return 64 * 1024 * 1024   # conservative fallback (v7x per-TensorCore VMEM)


_VMEM_PHYS = _vmem_capacity_bytes()
_VMEM_BUDGET = int(_VMEM_PHYS * 3 // 4)   # ~96 MiB on v5e/v6e, ~48 MiB on v7x


def _round_up(x, m):
    return ((x + m - 1) // m) * m


def _cdiv(a, b):
    return -(-a // b)


def _hidden_chunking(hidden):
    """Pad hidden to a lane multiple and split it into equal 128-aligned chunks.

    Returns (hid_padded, chunk, n_chunks) with chunk * n_chunks == hid_padded.
    Idempotent: applying it to hid_padded returns the same triple.
    """
    hid_lane = _round_up(hidden, 128)
    n_chunks = _cdiv(hid_lane, _HID_CHUNK)
    chunk = _round_up(_cdiv(hid_lane, n_chunks), 128)
    return chunk * n_chunks, chunk, n_chunks


def _pad2(a, rows, cols):
    r, c = a.shape
    if r == rows and c == cols:
        return a
    return jnp.pad(a, ((0, rows - r), (0, cols - c)))


def _pad1(a, n):
    if a.shape[0] == n:
        return a
    return jnp.pad(a, (0, n - a.shape[0]))


def _gelu(h):
    if _APPROX_GELU:
        # tanh-approx: lowers to the EUP (its own VLIW slot, ~free next to MXU).
        return jax.nn.gelu(h, approximate=True)
    # Exact erf form matches torch.nn.GELU(approximate='none').
    return 0.5 * h * (1.0 + jax.lax.erf(h * _INV_SQRT2))


def mlp_kernel(x_ref, w1_ref, b1_ref, w2_ref, b2_ref, o_ref, acc_ref):
    """One (M tile, hidden chunk) step of out = GELU(x @ W1 + b1) @ W2 + b2."""
    c = pl.program_id(1)

    @pl.when(c == 0)
    def _init():
        acc_ref[...] = jnp.zeros_like(acc_ref)

    # fc1 chunk: native-dtype operands on the MXU, f32 accumulation.
    h = jnp.dot(x_ref[...], w1_ref[...], preferred_element_type=jnp.float32)
    h = _gelu(h + b1_ref[...].astype(jnp.float32))

    # fc2 chunk: cast activation back to weight dtype (no-op for f32 weights).
    acc_ref[...] += jnp.dot(h.astype(w2_ref.dtype), w2_ref[...],
                            preferred_element_type=jnp.float32)

    @pl.when(c == pl.num_programs(1) - 1)
    def _finalize():
        o_ref[...] = (acc_ref[...]
                      + b2_ref[...].astype(jnp.float32)).astype(o_ref.dtype)


def pad_mlp_params(w1, b1, w2, b2):
    """Zero-pad weights/biases to lane-aligned shapes ONCE.

    Call this once at init and reuse the padded params across forward calls
    so the full weight matrices are not re-read/re-written in HBM per call.
    Returns ((w1_p, b1_p, w2_p, b2_p), out_features).
    """
    c_in, hidden = w1.shape
    assert w2.shape[0] == hidden and b1.shape[0] == hidden
    c_out = w2.shape[1]

    cin_p = _round_up(c_in, 128)
    cout_p = _round_up(c_out, 128)
    hid_p, _, _ = _hidden_chunking(hidden)

    w1_p = _pad2(w1, cin_p, hid_p)
    b1_p = _pad1(b1, hid_p).reshape(1, hid_p)
    w2_p = _pad2(w2, hid_p, cout_p)
    b2_p = _pad1(b2, cout_p).reshape(1, cout_p)
    return (w1_p, b1_p, w2_p, b2_p), c_out


@partial(jax.jit, static_argnames=("c_out",))
def mlp_forward(x, w1_p, b1_p, w2_p, b2_p, *, c_out):
    """
    x     : (..., in_features)                     (unpadded)
    w1_p  : (cin_p, hid_p)   b1_p : (1, hid_p)     (lane-padded, see pad_mlp_params)
    w2_p  : (hid_p, cout_p)  b2_p : (1, cout_p)
    c_out : original out_features (static)
    """
    orig_shape = x.shape
    c_in = orig_shape[-1]
    m = 1
    for d in orig_shape[:-1]:
        m *= d

    cin_p, hid_p = w1_p.shape
    cout_p = w2_p.shape[1]
    hid_chk, chunk, n_chunks = _hidden_chunking(hid_p)
    if hid_chk != hid_p:
        raise ValueError("weights must be padded with pad_mlp_params()")

    x_bytes = jnp.dtype(x.dtype).itemsize
    w_bytes = jnp.dtype(w1_p.dtype).itemsize

    # Row alignment matching dtype sublane packing: 8 f32 / 16 bf16 / 32 int8.
    row_align = max(8, 32 // x_bytes)

    # Per-grid-step VMEM footprint (counts Pallas's default double-buffering).
    def step_bytes(tm):
        return (2 * tm * cin_p * x_bytes                        # x tile (2 bufs)
                + 2 * tm * cout_p * x_bytes                     # out tile (2 bufs)
                + tm * cout_p * 4                               # f32 accumulator
                + 2 * (cin_p * chunk + chunk * cout_p) * w_bytes  # W1/W2 chunks (2 bufs)
                + 2 * 8 * (chunk + cout_p) * w_bytes            # bias blocks (2 bufs)
                + tm * chunk * (4 + w_bytes)                    # f32 h chunk + cast copy
                + tm * cout_p * 4)                              # f32 partial product

    tm = _TM_MAX
    while tm > row_align and step_bytes(tm) > _VMEM_BUDGET:
        tm //= 2
    tm = max(row_align, min(tm, _round_up(m, row_align)))

    # Guarantee >= 2 M-tiles when M allows so both v7x TensorCores get work.
    if m > row_align:
        while _round_up(m, tm) // tm < 2 and tm > row_align:
            tm = _round_up(max(row_align, tm // 2), row_align)
    m_pad = _round_up(m, tm)

    # Pad activations (weights are already padded).
    x2d = _pad2(x.reshape(m, c_in), m_pad, cin_p)

    est_vmem = step_bytes(tm)
    vmem_limit = int(min(_VMEM_PHYS * 9 // 10,
                         max(32 * 2 ** 20, est_vmem * 5 // 4)))

    n_m_tiles = m_pad // tm
    cost = pl.CostEstimate(
        flops=2 * m_pad * (cin_p * hid_p + hid_p * cout_p),
        transcendentals=m_pad * hid_p,
        bytes_accessed=(m_pad * cin_p * x_bytes
                        + m_pad * cout_p * x_bytes
                        + n_m_tiles * (cin_p * hid_p + hid_p * cout_p) * w_bytes),
    )

    out2d = pl.pallas_call(
        mlp_kernel,
        out_shape=jax.ShapeDtypeStruct((m_pad, cout_p), x.dtype),
        grid_spec=pltpu.PrefetchScalarGridSpec(
            num_scalar_prefetch=0,
            grid=(n_m_tiles, n_chunks),              # reduction (hidden) innermost
            in_specs=[
                pl.BlockSpec((tm, cin_p), lambda i, c: (i, 0)),     # x tile (resident over c)
                pl.BlockSpec((cin_p, chunk), lambda i, c: (0, c)),  # W1 chunk
                pl.BlockSpec((1, chunk), lambda i, c: (0, c)),      # b1 chunk
                pl.BlockSpec((chunk, cout_p), lambda i, c: (c, 0)), # W2 chunk
                pl.BlockSpec((1, cout_p), lambda i, c: (0, 0)),     # b2
            ],
            out_specs=pl.BlockSpec((tm, cout_p), lambda i, c: (i, 0)),
            scratch_shapes=[pltpu.VMEM((tm, cout_p), jnp.float32)],
        ),
        compiler_params=pltpu.CompilerParams(
            dimension_semantics=("parallel", "arbitrary"),
            vmem_limit_bytes=vmem_limit,
        ),
        cost_estimate=cost,
    )(x2d, w1_p, b1_p, w2_p, b2_p)

    return out2d[:m, :c_out].reshape(*orig_shape[:-1], c_out)


def init_mlp_params(key, in_features, hidden_features, out_features,
                    dtype=jnp.float32):
    """Deterministic init mimicking nn.Linear defaults (kaiming-uniform-ish)."""
    k1, k2, k3, k4 = jax.random.split(key, 4)
    bound1 = 1.0 / math.sqrt(in_features)
    bound2 = 1.0 / math.sqrt(hidden_features)
    w1 = jax.random.uniform(k1, (in_features, hidden_features),
                            dtype, -bound1, bound1)
    b1 = jax.random.uniform(k2, (hidden_features,), dtype, -bound1, bound1)
    w2 = jax.random.uniform(k3, (hidden_features, out_features),
                            dtype, -bound2, bound2)
    b2 = jax.random.uniform(k4, (out_features,), dtype, -bound2, bound2)
    return w1, b1, w2, b2


def _reference(x, w1, b1, w2, b2):
    h = x @ w1 + b1
    h = 0.5 * h * (1.0 + jax.lax.erf(h / math.sqrt(2.0)))
    return h @ w2 + b2


if __name__ == "__main__":
    key = jax.random.PRNGKey(0)

    # --- Test 1: small shapes consistent with the module (batch, seq, C). ---
    batch, seq = 2, 8
    in_f, hid_f, out_f = 16, 32, 16
    kx, kp, key = jax.random.split(key, 3)
    x = jax.random.normal(kx, (batch, seq, in_f), jnp.float32)
    w1, b1, w2, b2 = init_mlp_params(kp, in_f, hid_f, out_f)
    (w1_p, b1_p, w2_p, b2_p), c_out = pad_mlp_params(w1, b1, w2, b2)

    out = mlp_forward(x, w1_p, b1_p, w2_p, b2_p, c_out=c_out)
    jax.block_until_ready(out)
    ref = _reference(x, w1, b1, w2, b2)
    assert out.shape == (batch, seq, out_f)
    assert jnp.allclose(out, ref, atol=1e-5, rtol=1e-5)

    # --- Test 2: exercises the multi-chunk hidden reduction path. -----------
    batch2, seq2 = 2, 16
    in_f2, hid_f2, out_f2 = 48, 600, 40
    kx2, kp2 = jax.random.split(key)
    x2 = jax.random.normal(kx2, (batch2, seq2, in_f2), jnp.float32)
    w1b, b1b, w2b, b2b = init_mlp_params(kp2, in_f2, hid_f2, out_f2)
    (w1b_p, b1b_p, w2b_p, b2b_p), c_out2 = pad_mlp_params(w1b, b1b, w2b, b2b)

    out2 = mlp_forward(x2, w1b_p, b1b_p, w2b_p, b2b_p, c_out=c_out2)
    jax.block_until_ready(out2)
    ref2 = _reference(x2, w1b, b1b, w2b, b2b)
    assert out2.shape == (batch2, seq2, out_f2)
    assert jnp.allclose(out2, ref2, atol=1e-4, rtol=1e-4)

    print("KERNEL_OK")
</pallas_src>

<mosaic_0001>
module attributes {stable_mosaic.version = 11 : i64} {
  func.func @mlp_kernel(%arg0: i32, %arg1: i32, %arg2: memref<8x128xf32, #tpu.memory_space<vmem>>, %arg3: memref<128x128xf32, #tpu.memory_space<vmem>>, %arg4: memref<1x128xf32, #tpu.memory_space<vmem>>, %arg5: memref<128x128xf32, #tpu.memory_space<vmem>>, %arg6: memref<1x128xf32, #tpu.memory_space<vmem>>, %arg7: memref<8x128xf32, #tpu.memory_space<vmem>>, %arg8: memref<8x128xf32, #tpu.memory_space<vmem>>) attributes {dimension_semantics = [#tpu.dimension_semantics<parallel>, #tpu.dimension_semantics<arbitrary>], iteration_bounds = array<i64: 2, 1>, scalar_prefetch = 0 : i64, scratch_operands = 1 : i64, tpu.core_type = #tpu.core_type<tc>, window_params = [{transform_indices = @transform_0, window_bounds = array<i64: 8, 128>}, {transform_indices = @transform_1, window_bounds = array<i64: 128, 128>}, {transform_indices = @transform_2, window_bounds = array<i64: 1, 128>}, {transform_indices = @transform_3, window_bounds = array<i64: 128, 128>}, {pipeline_mode = #tpu.pipeline_mode<synchronous>, transform_indices = @transform_4, window_bounds = array<i64: 1, 128>}, {transform_indices = @transform_5, window_bounds = array<i64: 8, 128>}]} {
    %c0_i32 = arith.constant 0 : i32
    %0 = arith.cmpi eq, %arg1, %c0_i32 : i32
    %1 = arith.extui %0 : i1 to i32
    %c0_i32_0 = arith.constant 0 : i32
    %2 = arith.cmpi ne, %1, %c0_i32_0 : i32
    scf.if %2 {
      %cst_18 = arith.constant 0.000000e+00 : f32
      %25 = vector.broadcast %cst_18 : f32 to vector<8x128xf32>
      %c0_19 = arith.constant 0 : index
      %c0_20 = arith.constant 0 : index
      %26 = vector.load %arg8[%c0_19, %c0_20] : memref<8x128xf32, #tpu.memory_space<vmem>>, vector<8x128xf32>
      tpu.vector_store %arg8[%c0_19, %c0_20], %25 {strides = array<i32>} : memref<8x128xf32, #tpu.memory_space<vmem>>, vector<8x128xf32>,
    } else {
    }
    %c0 = arith.constant 0 : index
    %c0_1 = arith.constant 0 : index
    %3 = vector.load %arg2[%c0, %c0_1] : memref<8x128xf32, #tpu.memory_space<vmem>>, vector<8x128xf32>
    %c0_2 = arith.constant 0 : index
    %c0_3 = arith.constant 0 : index
    %4 = vector.load %arg3[%c0_2, %c0_3] : memref<128x128xf32, #tpu.memory_space<vmem>>, vector<128x128xf32>
    %cst = arith.constant dense<0.000000e+00> : vector<8x128xf32>
    %5 = tpu.matmul %3, %4, %cst {dimension_numbers = #tpu.dot_dimension_numbers<[1], [0], [0], [1], [0, 0, 1, 1], [], []>} : vector<8x128xf32>, vector<128x128xf32>, vector<8x128xf32> -> vector<8x128xf32>
    %c0_4 = arith.constant 0 : index
    %c0_5 = arith.constant 0 : index
    %6 = vector.load %arg4[%c0_4, %c0_5] : memref<1x128xf32, #tpu.memory_space<vmem>>, vector<1x128xf32>
    %7 = vector.broadcast %6 : vector<1x128xf32> to vector<8x128xf32>
    %8 = arith.addf %5, %7 : vector<8x128xf32>
    %cst_6 = arith.constant 5.000000e-01 : f32
    %9 = vector.broadcast %cst_6 : f32 to vector<8x128xf32>
    %10 = arith.mulf %9, %8 : vector<8x128xf32>
    %cst_7 = arith.constant 0.707106769 : f32
    %11 = vector.broadcast %cst_7 : f32 to vector<8x128xf32>
    %12 = arith.mulf %8, %11 : vector<8x128xf32>
    %13 = math.erf %12 : vector<8x128xf32>
    %cst_8 = arith.constant 1.000000e+00 : f32
    %14 = vector.broadcast %cst_8 : f32 to vector<8x128xf32>
    %15 = arith.addf %14, %13 : vector<8x128xf32>
    %16 = arith.mulf %10, %15 : vector<8x128xf32>
    %c0_9 = arith.constant 0 : index
    %c0_10 = arith.constant 0 : index
    %17 = vector.load %arg8[%c0_9, %c0_10] : memref<8x128xf32, #tpu.memory_space<vmem>>, vector<8x128xf32>
    %c0_11 = arith.constant 0 : index
    %c0_12 = arith.constant 0 : index
    %18 = vector.load %arg5[%c0_11, %c0_12] : memref<128x128xf32, #tpu.memory_space<vmem>>, vector<128x128xf32>
    %cst_13 = arith.constant dense<0.000000e+00> : vector<8x128xf32>
    %19 = tpu.matmul %16, %18, %cst_13 {dimension_numbers = #tpu.dot_dimension_numbers<[1], [0], [0], [1], [0, 0, 1, 1], [], []>} : vector<8x128xf32>, vector<128x128xf32>, vector<8x128xf32> -> vector<8x128xf32>
    %20 = arith.addf %17, %19 : vector<8x128xf32>
    %c0_14 = arith.constant 0 : index
    %c0_15 = arith.constant 0 : index
    %21 = vector.load %arg8[%c0_14, %c0_15] : memref<8x128xf32, #tpu.memory_space<vmem>>, vector<8x128xf32>
    tpu.vector_store %arg8[%c0_14, %c0_15], %20 {strides = array<i32>} : memref<8x128xf32, #tpu.memory_space<vmem>>, vector<8x128xf32>,
    %c0_i32_16 = arith.constant 0 : i32
    %22 = arith.cmpi eq, %arg1, %c0_i32_16 : i32
    %23 = arith.extui %22 : i1 to i32
    %c0_i32_17 = arith.constant 0 : i32
    %24 = arith.cmpi ne, %23, %c0_i32_17 : i32
    scf.if %24 {
      %c0_18 = arith.constant 0 : index
      %c0_19 = arith.constant 0 : index
      %25 = vector.load %arg8[%c0_18, %c0_19] : memref<8x128xf32, #tpu.memory_space<vmem>>, vector<8x128xf32>
      %c0_20 = arith.constant 0 : index
      %c0_21 = arith.constant 0 : index
      %26 = vector.load %arg6[%c0_20, %c0_21] : memref<1x128xf32, #tpu.memory_space<vmem>>, vector<1x128xf32>
      %27 = vector.broadcast %26 : vector<1x128xf32> to vector<8x128xf32>
      %28 = arith.addf %25, %27 : vector<8x128xf32>
      %c0_22 = arith.constant 0 : index
      %c0_23 = arith.constant 0 : index
      %29 = vector.load %arg7[%c0_22, %c0_23] : memref<8x128xf32, #tpu.memory_space<vmem>>, vector<8x128xf32>
      tpu.vector_store %arg7[%c0_22, %c0_23], %28 {strides = array<i32>} : memref<8x128xf32, #tpu.memory_space<vmem>>, vector<8x128xf32>,
    } else {
    }
    return
  }
  func.func @transform_0(%arg0: i32, %arg1: i32) -> (i32, i32) {
    %c0_i32 = arith.constant 0 : i32
    %c0_i32_0 = arith.constant 0 : i32
    return %arg0, %c0_i32 : i32, i32
  }
  func.func @transform_1(%arg0: i32, %arg1: i32) -> (i32, i32) {
    %c0_i32 = arith.constant 0 : i32
    %c0_i32_0 = arith.constant 0 : i32
    return %c0_i32, %arg1 : i32, i32
  }
  func.func @transform_2(%arg0: i32, %arg1: i32) -> (i32, i32) {
    %c0_i32 = arith.constant 0 : i32
    %c0_i32_0 = arith.constant 0 : i32
    return %c0_i32, %arg1 : i32, i32
  }
  func.func @transform_3(%arg0: i32, %arg1: i32) -> (i32, i32) {
    %c0_i32 = arith.constant 0 : i32
    %c0_i32_0 = arith.constant 0 : i32
    return %arg1, %c0_i32 : i32, i32
  }
  func.func @transform_4(%arg0: i32, %arg1: i32) -> (i32, i32) {
    %c0_i32 = arith.constant 0 : i32
    %c0_i32_0 = arith.constant 0 : i32
    %c0_i32_1 = arith.constant 0 : i32
    return %c0_i32, %c0_i32_0 : i32, i32
  }
  func.func @transform_5(%arg0: i32, %arg1: i32) -> (i32, i32) {
    %c0_i32 = arith.constant 0 : i32
    %c0_i32_0 = arith.constant 0 : i32
    return %arg0, %c0_i32 : i32, i32
  }
}

</mosaic_0001>

<bundles_post_ra>
// kernel: mlp_forward.1
= control target key start
LH: loop header
LB: loop body
LE: loop exit
PB: predicated region body
PF: predicated region fallthrough
CT: control target
= control target key end

     0   :  { %10 = vsyncpa [#allocation4], 0  ;;  %s1018_s0 = inlined_call_operand.vmem [shape: f32[16,128], index: 0, kind: input, shape index: {}]   ;;  %s1019_s1 = inlined_call_operand.hbm [shape: f32[128,128], index: 1, kind: input, shape index: {}]   ;;  %s1020_s2 = inlined_call_operand.vmem [shape: f32[1,128], index: 2, kind: input, shape index: {}]   ;;  %s1021_s3 = inlined_call_operand.hbm [shape: f32[128,128], index: 3, kind: input, shape index: {}]   ;;  %s1022_s4 = inlined_call_operand.vmem [shape: f32[1,128], index: 4, kind: input, shape index: {}]   ;;  %s1023_s5 = inlined_call_operand.vmem [shape: f32[16,128], index: 5, kind: output, shape index: {}]  }
   0x1   :  { %11 = vsyncpa [#allocation6], 0  ;;  %s889_s18 = smov 0   ;;  %s891_s19 = smov 0  }
   0x2   :  { %s893_s20 = smov 0  }
   0x3 LB: > { %s598_s21 = sadd.s32 4294967295, %s851_s20   ;;  %s29_s22 = sadd.s32 1, %s847_s19  ;;  %s851_s20 = sphi %s893_s20, %s17_s20   ;;  %s847_s19 = sphi %s891_s19, %s1028_s19   ;;  %s843_s18 = sphi %s889_s18, %s1027_s18  }
   0x4   : > { %p31_p0 = scmp.ge.s32.totalorder %s29_s22, 2  ;;  %p600_p1 = scmp.ge.s32.totalorder %s851_s20, 1 }
   0x5   : > { %p185_p2 = scmp.lt.s32.totalorder %s851_s20, 3  ;;  %p914_p4 = scmp.eq.s32.totalorder %s598_s21, 0 }
   0x6   : > { %s1030_s22 = smov (%p31_p0, %s29_s22), 0  ;;  %s853_s25 = smov [#allocation3]  }
   0x7   : > { %p910_p3 = pnand %p600_p1, %p185_p2  ;;  %s199_s26 = sshll.u32 %s853_s25, 4  ;;  %s200_s26 = int_to_ptr.vmem [resolvable:$true] %s199_s26 }
   0x8   : > { %s854_s28 = smov [#allocation5]   ;;  %s780_s30 = scalar_lea.vmem %s200_s26, 2048 }
   0x9   : > { %p726_p5 = pneg %p910_p3  ;;  %s221_s29 = sshll.u32 %s854_s28, 4  ;;  %s222_s29 = int_to_ptr.vmem [resolvable:$true] %s221_s29 }
   0xa   : > { %p781_p8 = scmp.ne.s32.totalorder %s200_s26, %s780_s30  ;;  %p788_p11 = scmp.lt.s32.totalorder %s200_s26, %s200_s26 }
   0xb   : > { %p922_p6 = pnand %p914_p4, %p726_p5  ;;  %p789_p12 = scmp.lt.s32.totalorder %s780_s30, %s780_s30 }
   0xd   : > { %p771_p7 = pneg %p922_p6  ;;  %p790_p13 = por %p789_p12, %p788_p11 }
   0xf   : > { %p783_p9 = pnand %p781_p8, %p771_p7 }
  0x11   : > { %p784_p10 = pneg %p783_p9 }
  0x13   : > { %p791_p0 = pnand %p790_p13, %p784_p10 }
  0x15   : > { %794 = shalt.err (!%p791_p0)
}
  0x16   : > { %s855_s6 = smov 128   ;;  %s856_s7 = smov 8  }
  0x17   : > { %729 = dma.hbm_to_vmem [thread:$0]  (!%p922_p6), %s1019_s1, 2048, %s200_s26, [#allocation4], %s855_s6, %s855_s6, %s856_s7  }
  0x18   : > { %s806_s10 = scalar_lea.vmem %s222_s29, 2048  ;;  %p814_p8 = scmp.lt.s32.totalorder %s222_s29, %s222_s29 }
  0x19   : > { %p807_p1 = scmp.ne.s32.totalorder %s222_s29, %s806_s10  ;;  %p815_p9 = scmp.lt.s32.totalorder %s806_s10, %s806_s10 }
  0x1b   : > { %p809_p2 = pnand %p807_p1, %p771_p7  ;;  %p816_p11 = por %p815_p9, %p814_p8 }
  0x1d   : > { %p810_p5 = pneg %p809_p2 }
  0x1f   : > { %p817_p10 = pnand %p816_p11, %p810_p5 }
  0x21   : > { %820 = shalt.err (!%p817_p10)
}
  0x22   : > { %732 = dma.hbm_to_vmem [thread:$0]  (!%p922_p6), %s1021_s3, 2048, %s222_s29, [#allocation6], %s855_s6, %s855_s6, %s856_s7  }
  0x23   : > { %247 = sbr.rel (%p910_p3) target bundleno = 488 (0x1e8), region = 40 }
  0x28   : > { %834 = dma.done.wait (%p914_p4), [#allocation4], 2048  }
  0x29   : > { %836 = vsyncadd (%p914_p4), [#allocation4], 4294965248 }
  0x2a   : > { %838 = dma.done.wait (%p914_p4), [#allocation6], 2048  }
  0x2b   : > { %840 = vsyncadd (%p914_p4), [#allocation6], 4294965248  ;;  %v857_v0 = vmov 0.0   ;;  %vm858_vm0 = vmmov 0   ;;  %v313_v1 = vld [vmem:[#allocation3 + $0x78] sm:$0xff]  ;;  %v312_v2 = vld [vmem:[#allocation3 + $0x70] sm:$0xff] }
  0x2c   : > { %648 = vmatprep.subr.mxu0 %v857_v0  ;;  %680 = vmatprep.mubr.msk.f32.mxu0 %vm858_vm0, %v857_v0  ;;  %v311_v3 = vld [vmem:[#allocation3 + $0x68] sm:$0xff]  ;;  %v310_v4 = vld [vmem:[#allocation3 + $0x60] sm:$0xff]  ;;  %v412_v5 = vld [vmem:[#allocation5 + $0x78] sm:$0xff]  ;;  %p280_p3 = scmp.lt.s32.totalorder %s843_s18, 1 }
  0x2d   : > { %683 = vmatprep.subr.mxu1 %v857_v0  ;;  %715 = vmatprep.mubr.msk.f32.mxu1 %vm858_vm0, %v857_v0  ;;  %v309_v6 = vld [vmem:[#allocation3 + $0x58] sm:$0xff]  ;;  %v411_v7 = vld [vmem:[#allocation5 + $0x70] sm:$0xff]  ;;  %v410_v8 = vld [vmem:[#allocation5 + $0x68] sm:$0xff] }
  0x2e   : > { %649 = vmatpush3.msra.mxu0 %v313_v1  ;;  %684 = vmatpush3.msra.mxu1 %v412_v5  ;;  %v308_v9 = vld [vmem:[#allocation3 + $0x50] sm:$0xff]  ;;  %v409_v10 = vld [vmem:[#allocation5 + $0x60] sm:$0xff]  ;;  %v307_v11 = vld [vmem:[#allocation3 + $0x48] sm:$0xff]  ;;  %s1032_s18 = smov (!%p280_p3, %s843_s18), 1 }
  0x2f   : > { %650 = vmatprep.subr.mxu0 %v857_v0  ;;  %685 = vmatprep.subr.mxu1 %v857_v0  ;;  %v306_v12 = vld [vmem:[#allocation3 + $0x40] sm:$0xff]  ;;  %v305_v13 = vld [vmem:[#allocation3 + $0x38] sm:$0xff]  ;;  %v304_v14 = vld [vmem:[#allocation3 + $0x30] sm:$0xff]  ;;  %s608_s13 = sshll.u32 %s1032_s18, 3 }
  0x30   : > { %651 = vmatpush3.msra.mxu0 %v312_v2  ;;  %686 = vmatpush3.msra.mxu1 %v411_v7  ;;  %v303_v15 = vld [vmem:[#allocation3 + $0x28] sm:$0xff]  ;;  %v302_v16 = vld [vmem:[#allocation3 + $0x20] sm:$0xff]  ;;  %v301_v17 = vld [vmem:[#allocation3 + $0x18] sm:$0xff]  ;;  %s283_s16 = scalar_lea.vmem %s1018_s0, %s608_s13  ;;  %s291_s27 = scalar_lea.vmem %s1023_s5, %s608_s13 }
  0x31   : > { %652 = vmatprep.subr.mxu0 %v857_v0  ;;  %687 = vmatprep.subr.mxu1 %v857_v0  ;;  %v300_v18 = vld [vmem:[#allocation3 + $0x10] sm:$0xff]  ;;  %v299_v19 = vld [vmem:[#allocation3 + $0x8] sm:$0xff]  ;;  %v298_v20 = vld [vmem:[#allocation3] sm:$0xff] }
  0x32   : > { %653 = vmatpush3.msra.mxu0 %v311_v3  ;;  %688 = vmatpush3.msra.mxu1 %v410_v8  ;;  %v297_v21 = vld [vmem:[%s283_s16] sm:$0xff]  ;;  %v408_v22 = vld [vmem:[#allocation5 + $0x58] sm:$0xff]  ;;  %v407_v23 = vld [vmem:[#allocation5 + $0x50] sm:$0xff] }
  0x33   : > { %654 = vmatprep.subr.mxu0 %v857_v0  ;;  %689 = vmatprep.subr.mxu1 %v857_v0  ;;  %v406_v24 = vld [vmem:[#allocation5 + $0x48] sm:$0xff]  ;;  %v405_v25 = vld [vmem:[#allocation5 + $0x40] sm:$0xff]  ;;  %v404_v26 = vld [vmem:[#allocation5 + $0x38] sm:$0xff] }
  0x34   : > { %655 = vmatpush3.msra.mxu0 %v310_v4  ;;  %690 = vmatpush3.msra.mxu1 %v409_v10  ;;  %v403_v27 = vld [vmem:[#allocation5 + $0x30] sm:$0xff]  ;;  %v402_v28 = vld [vmem:[#allocation5 + $0x28] sm:$0xff]  ;;  %v401_v29 = vld [vmem:[#allocation5 + $0x20] sm:$0xff] }
  0x35   : > { %656 = vmatprep.subr.mxu0 %v857_v0  ;;  %691 = vmatprep.subr.mxu1 %v857_v0  ;;  %v400_v30 = vld [vmem:[#allocation5 + $0x18] sm:$0xff]  ;;  %v399_v31 = vld [vmem:[#allocation5 + $0x10] sm:$0xff]  ;;  %v398_v32 = vld [vmem:[#allocation5 + $0x8] sm:$0xff] }
  0x36   : > { %657 = vmatpush3.msra.mxu0 %v309_v6  ;;  %692 = vmatpush3.msra.mxu1 %v408_v22  ;;  %v397_v33 = vld [vmem:[#allocation5] sm:$0xff] }
  0x37   : > { %658 = vmatprep.subr.mxu0 %v857_v0  ;;  %693 = vmatprep.subr.mxu1 %v857_v0  ;;  %v610_v34 = vld [vmem:[%s1020_s2] ss:$0 sm:$0xff] }
  0x38   : > { %659 = vmatpush3.msra.mxu0 %v308_v9  ;;  %694 = vmatpush3.msra.mxu1 %v407_v23  ;;  %v611_v43 = vld [vmem:[%s1022_s4] ss:$0 sm:$0xff] }
  0x39   : > { %660 = vmatprep.subr.mxu0 %v857_v0  ;;  %695 = vmatprep.subr.mxu1 %v857_v0 }
  0x3a   : > { %661 = vmatpush3.msra.mxu0 %v307_v11  ;;  %696 = vmatpush3.msra.mxu1 %v406_v24 }
  0x3b   : > { %662 = vmatprep.subr.mxu0 %v857_v0  ;;  %697 = vmatprep.subr.mxu1 %v857_v0 }
  0x3c   : > { %663 = vmatpush3.msra.mxu0 %v306_v12  ;;  %698 = vmatpush3.msra.mxu1 %v405_v25 }
  0x3d   : > { %664 = vmatprep.subr.mxu0 %v857_v0  ;;  %699 = vmatprep.subr.mxu1 %v857_v0 }
  0x3e   : > { %665 = vmatpush3.msra.mxu0 %v305_v13  ;;  %700 = vmatpush3.msra.mxu1 %v404_v26 }
  0x3f   : > { %666 = vmatprep.subr.mxu0 %v857_v0  ;;  %701 = vmatprep.subr.mxu1 %v857_v0 }
  0x40   : > { %667 = vmatpush3.msra.mxu0 %v304_v14  ;;  %702 = vmatpush3.msra.mxu1 %v403_v27 }
  0x41   : > { %668 = vmatprep.subr.mxu0 %v857_v0  ;;  %703 = vmatprep.subr.mxu1 %v857_v0 }
  0x42   : > { %669 = vmatpush3.msra.mxu0 %v303_v15  ;;  %704 = vmatpush3.msra.mxu1 %v402_v28 }
  0x43   : > { %670 = vmatprep.subr.mxu0 %v857_v0  ;;  %705 = vmatprep.subr.mxu1 %v857_v0 }
  0x44   : > { %671 = vmatpush3.msra.mxu0 %v302_v16  ;;  %706 = vmatpush3.msra.mxu1 %v401_v29 }
  0x45   : > { %672 = vmatprep.subr.mxu0 %v857_v0  ;;  %707 = vmatprep.subr.mxu1 %v857_v0 }
  0x46   : > { %673 = vmatpush3.msra.mxu0 %v301_v17  ;;  %708 = vmatpush3.msra.mxu1 %v400_v30 }
  0x47   : > { %674 = vmatprep.subr.mxu0 %v857_v0  ;;  %709 = vmatprep.subr.mxu1 %v857_v0 }
  0x48   : > { %675 = vmatpush3.msra.mxu0 %v300_v18  ;;  %710 = vmatpush3.msra.mxu1 %v399_v31 }
  0x49   : > { %676 = vmatprep.subr.mxu0 %v857_v0  ;;  %711 = vmatprep.subr.mxu1 %v857_v0 }
  0x4a   : > { %677 = vmatpush3.msra.mxu0 %v299_v19  ;;  %712 = vmatpush3.msra.mxu1 %v398_v32 }
  0x4b   : > { %678 = vmatprep.subr.mxu0 %v857_v0  ;;  %713 = vmatprep.subr.mxu1 %v857_v0 }
  0x4c   : > { %679 = vmatpush3.msra.mxu0 %v298_v20  ;;  %714 = vmatpush3.msra.mxu1 %v397_v33 }
  0x4d   : > { %681 = vmatmul.mubr.f32.vlgmr.msra.gmra.mxu0 %v297_v21 }
 0x10d   : > { %v387_v35 = vpop.f32.mrf.mxu0 }
 0x10e   : > { %v388_v36 = vadd.f32 %v610_v34, %v387_v35 }
 0x10f   : > { %v682_v37 = vpop.f32.mrf.mxu0 }
 0x110   : > { %v392_v38 = vmul.f32 0.70710677, %v388_v36  ;;  %v391_v40 = vmul.f32 0.5, %v388_v36 }
 0x112   : > { %767 = verf.f32 %v392_v38 }
 0x11f   : > { %v768_v39 = vpop.eup %767 }
 0x120   : > { %v394_v41 = vadd.f32 1.0, %v768_v39 }
 0x122   : > { %v395_v42 = vmul.f32 %v394_v41, %v391_v40 }
 0x124   : > { %716 = vmatmul.mubr.f32.vlgmr.msra.gmra.mxu1 %v395_v42 }
 0x1e4   : > { %v479_v44 = vpop.f32.mrf.mxu1 }
 0x1e5   : > { %v496_v45 = vadd.f32 %v611_v43, %v479_v44 }
 0x1e6   : > { %v717_v46 = vpop.f32.mrf.mxu1 }
 0x1e7   : > { %497 = vst [vmem:[%s291_s27] sm:$0xff] %v496_v45 }
 0x1e8 PF: > { %s17_s20 = sadd.s32 1, %s851_s20   ;;  %s1027_s18 = smov %s847_s19 }
 0x1e9   : > { %p14_p4 = scmp.ge.s32.totalorder %s17_s20, 4   ;;  %s1028_s19 = smov %s1030_s22 }
 0x1eb   :  { %16 = sbr.rel (!%p14_p4) target bundleno = 3 (0x3), region = 92 }
 0x1f0   :  { %517 = vsyncpa [#allocation4], 1 }
 0x1f1   :  { %519 = vsyncpa [#allocation4 + $0x1], 1 }
 0x1f2   :  { %520 = vsyncpa [#allocation6], 1 }

</bundles_post_ra>
